<compile_context>
chip_gen: v6e
topology: v6e:2x2x1
jax: 0.10.0
libtpu: 0.0.40
codegen_flags: <defaults>
</compile_context>

<pallas_src>
import functools

import jax
import jax.numpy as jnp
from jax.experimental import pallas as pl
from jax.experimental.pallas import tpu as pltpu


# ----------------------------- kernels --------------------------------------

def _max_over_w_kernel(x_ref, o_ref, *, h, w):
    # x_ref: (C_BLK, H*W) lane-packed native-dtype tile; o_ref: (C_BLK, H).
    c_blk = x_ref.shape[0]
    x = x_ref[...].reshape(c_blk, h, w)          # VMEM-local relayout (free: XLU/VPU slack)
    o_ref[...] = jnp.max(x, axis=-1)


def _avg_3row_kernel(x_ref, o_ref, *, h, w, h_out):
    # x_ref: (C_BLK, H*W) lane-packed; o_ref: (C_BLK, H_out); H_out = (H-3)//3 + 1.
    c_blk = x_ref.shape[0]
    seg = 3 * w
    x = x_ref[...]
    if 3 * h_out != h:                           # static: drop floor-mode remainder rows
        x = x[:, : h_out * seg]                  # contiguous lane-prefix of the block
    x = x.reshape(c_blk, h_out, seg)             # single native-dtype relayout
    # f32 accumulation streamed inside the reduce (no full-block f32 temporary).
    s = jnp.sum(x, axis=-1, dtype=jnp.float32)
    o_ref[...] = (s * (1.0 / seg)).astype(o_ref.dtype)


# ----------------------------- tiling helpers ---------------------------------

def _vmem_capacity_bytes():
    try:
        cap = int(pltpu.get_tpu_info().vmem_capacity_bytes)
        if cap > 0:
            return cap
    except Exception:
        pass
    return 64 << 20   # conservative fallback: v7x per-TensorCore VMEM


def _sublane_align(itemsize):
    # Min second-to-last-dim tile: 8 rows (f32), 16 (bf16), 32 (int8/fp8).
    return max(8, 32 // max(1, int(itemsize)))


def _padded_block_bytes(rows, cols, itemsize):
    sub = _sublane_align(itemsize)
    prow = ((rows + sub - 1) // sub) * sub
    pcol = ((cols + 127) // 128) * 128
    return prow * pcol * int(itemsize)


def _choose_c_blk(nc, real_row_bytes, itemsize, per_block_target):
    """Block rows: well-aligned, ~per_block_target real bytes, >=2 grid steps when possible."""
    align = _sublane_align(itemsize)
    if nc <= align:
        return nc                                   # full leading extent: always legal
    cap = max(1, per_block_target // max(1, real_row_bytes))
    cap = min(cap, max(align, nc // 2))             # >=2 grid steps -> both v7x TCs busy
    cap = min(cap, nc)
    return max(align, (cap // align) * align)


# ----------------------------- pallas_call wrapper ----------------------------

def _run_pool(x2, kernel, in_cols, out_cols, out_dtype):
    nc = x2.shape[0]
    itemsize = x2.dtype.itemsize
    out_itemsize = jnp.dtype(out_dtype).itemsize

    phys = _vmem_capacity_bytes()
    # 8-16 MiB of *real* bytes per input block; generation-aware cap (v7x: 64 MiB VMEM).
    per_block_target = min(16 << 20, phys // 8)
    row_bytes = in_cols * itemsize
    c_blk = _choose_c_blk(nc, row_bytes, itemsize, per_block_target)
    num_blocks = pl.cdiv(nc, c_blk)

    in_blk_bytes = _padded_block_bytes(c_blk, in_cols, itemsize)
    out_blk_bytes = _padded_block_bytes(c_blk, out_cols, out_itemsize)
    need = 2 * (in_blk_bytes + out_blk_bytes)       # default Buffered(2) pipelining
    vmem_limit = int(max(16 << 20, min(phys // 2, need + (4 << 20))))

    params = pltpu.CompilerParams(
        dimension_semantics=("parallel",),
        vmem_limit_bytes=vmem_limit,
    )
    return pl.pallas_call(
        kernel,
        out_shape=jax.ShapeDtypeStruct((nc, out_cols), out_dtype),
        grid_spec=pltpu.PrefetchScalarGridSpec(
            num_scalar_prefetch=0,
            grid=(num_blocks,),
            in_specs=[pl.BlockSpec((c_blk, in_cols), lambda i: (i, 0))],
            out_specs=pl.BlockSpec((c_blk, out_cols), lambda i: (i, 0)),
        ),
        compiler_params=params,
    )(x2)


# ----------------------------- public wrapper ---------------------------------

def channel_wise_max_pool(x, pool_type="dilated_kernel"):
    """x: (N, C, H, W) float array. Returns pooled tensor matching the PyTorch module."""
    n, c, h, w = x.shape
    nc = n * c
    x2 = x.reshape(nc, h * w)                        # free, contiguous lane-packing reshape

    if pool_type == "dilated_kernel":
        # max_pool2d kernel_size=(1, W) -> (N, C, H, 1)
        kernel = functools.partial(_max_over_w_kernel, h=h, w=w)
        out = _run_pool(x2, kernel, in_cols=h * w, out_cols=h, out_dtype=x.dtype)
        return out.reshape(n, c, h, 1)

    elif pool_type == "atrous_kernel":
        # avg_pool2d kernel_size=(3, W), default stride -> (N, C, (H-3)//3+1, 1)
        h_out = (h - 3) // 3 + 1
        if h_out <= 0:
            # TODO(synk): PyTorch raises for H < 3; we return an empty result instead.
            return jnp.zeros((n, c, 0, 1), dtype=x.dtype)
        kernel = functools.partial(_avg_3row_kernel, h=h, w=w, h_out=h_out)
        out = _run_pool(x2, kernel, in_cols=h * w, out_cols=h_out, out_dtype=x.dtype)
        return out.reshape(n, c, h_out, 1)

    else:
        raise ValueError(f"unknown pool_type: {pool_type}")


# ----------------------------- main ------------------------------------------

if __name__ == "__main__":
    key = jax.random.PRNGKey(0)
    k1, k2 = jax.random.split(key)

    # Input consistent with the module's forward: 4-D NCHW "extraction conv weights".
    x = jax.random.normal(k1, (2, 4, 16, 16), dtype=jnp.float32)

    # --- dilated_kernel path (module default): max over W ---------------------
    y_max = jax.block_until_ready(channel_wise_max_pool(x, "dilated_kernel"))
    ref_max = jnp.max(x, axis=3, keepdims=True)
    assert y_max.shape == (2, 4, 16, 1), y_max.shape
    assert jnp.allclose(y_max, ref_max), "max-pool mismatch"

    # --- atrous_kernel path, H % 3 != 0 (remainder-row drop branch) -----------
    y_avg = jax.block_until_ready(channel_wise_max_pool(x, "atrous_kernel"))
    h_out = (16 - 3) // 3 + 1
    ref_avg = jnp.mean(
        x[:, :, : 3 * h_out, :].reshape(2, 4, h_out, 3 * 16), axis=-1, keepdims=True
    )
    assert y_avg.shape == (2, 4, h_out, 1), y_avg.shape
    assert jnp.allclose(y_avg, ref_avg, atol=1e-5), "avg-pool mismatch (H%3!=0)"

    # --- atrous_kernel path, H % 3 == 0 (no remainder rows) -------------------
    xb = jax.random.normal(k2, (2, 4, 12, 16), dtype=jnp.float32)
    y_avg_b = jax.block_until_ready(channel_wise_max_pool(xb, "atrous_kernel"))
    hb_out = (12 - 3) // 3 + 1
    ref_avg_b = jnp.mean(
        xb.reshape(2, 4, hb_out, 3 * 16), axis=-1, keepdims=True
    )
    assert y_avg_b.shape == (2, 4, hb_out, 1), y_avg_b.shape
    assert jnp.allclose(y_avg_b, ref_avg_b, atol=1e-5), "avg-pool mismatch (H%3==0)"

    print("KERNEL_OK")
</pallas_src>

<mosaic_0001>
module attributes {stable_mosaic.version = 11 : i64} {
  func.func @_max_over_w_kernel(%arg0: i32, %arg1: memref<8x256xf32, #tpu.memory_space<vmem>>, %arg2: memref<8x16xf32, #tpu.memory_space<vmem>>) attributes {dimension_semantics = [#tpu.dimension_semantics<parallel>], iteration_bounds = array<i64: 1>, scalar_prefetch = 0 : i64, scratch_operands = 0 : i64, tpu.core_type = #tpu.core_type<tc>, window_params = [{transform_indices = @transform_0, window_bounds = array<i64: 8, 256>}, {transform_indices = @transform_1, window_bounds = array<i64: 8, 16>}]} {
    %c0 = arith.constant 0 : index
    %c0_0 = arith.constant 0 : index
    %0 = vector.load %arg1[%c0, %c0_0] : memref<8x256xf32, #tpu.memory_space<vmem>>, vector<8x256xf32>
    %1 = vector.shape_cast %0 : vector<8x256xf32> to vector<8x16x16xf32>
    %cst = arith.constant dense<0xFF800000> : vector<8x16xf32>
    %2 = vector.multi_reduction <maximumf>, %1, %cst [2] : vector<8x16x16xf32> to vector<8x16xf32>
    %c0_1 = arith.constant 0 : index
    %c0_2 = arith.constant 0 : index
    %3 = vector.load %arg2[%c0_1, %c0_2] : memref<8x16xf32, #tpu.memory_space<vmem>>, vector<8x16xf32>
    tpu.vector_store %arg2[%c0_1, %c0_2], %2 {strides = array<i32>} : memref<8x16xf32, #tpu.memory_space<vmem>>, vector<8x16xf32>,
    return
  }
  func.func @transform_0(%arg0: i32) -> (i32, i32) {
    %c0_i32 = arith.constant 0 : i32
    %c0_i32_0 = arith.constant 0 : i32
    return %arg0, %c0_i32 : i32, i32
  }
  func.func @transform_1(%arg0: i32) -> (i32, i32) {
    %c0_i32 = arith.constant 0 : i32
    %c0_i32_0 = arith.constant 0 : i32
    return %arg0, %c0_i32 : i32, i32
  }
}

</mosaic_0001>

<bundles_post_ra>
// kernel: tpu_custom_call.1
= control target key start
LH: loop header
LB: loop body
LE: loop exit
PB: predicated region body
PF: predicated region fallthrough
CT: control target
= control target key end

     0   :  { %6 = vsyncpa [#allocation3], 0  ;;  %s700_s0 = inlined_call_operand.hbm [shape: f32[8,256], index: 0, kind: input, shape index: {}]   ;;  %s701_s1 = inlined_call_operand.hbm [shape: f32[8,16], index: 1, kind: output, shape index: {}]  }
   0x1   :  { %7 = vsyncpa [#allocation4], 0  ;;  %s566_s6 = smov [#allocation2]  }
   0x2   :  { %s14_s7 = sshll.u32 %s566_s6, 4  ;;  %s15_s7 = int_to_ptr.vmem [resolvable:$true] %s14_s7 }
   0x3   :  { %s530_s8 = scalar_lea.vmem %s15_s7, 256  ;;  %p535_p1 = scmp.lt.s32.totalorder %s15_s7, %s15_s7 }
   0x4   :  { %p531_p0 = scmp.ne.s32.totalorder %s15_s7, %s530_s8  ;;  %p536_p2 = scmp.lt.s32.totalorder %s530_s8, %s530_s8 }
   0x6   :  { %p537_p3 = por %p536_p2, %p535_p1 }
   0x8   :  { %p538_p4 = pnand %p537_p3, %p531_p0 }
   0xa   :  { %541 = shalt.err (!%p538_p4)
}
   0xb   :  { %17 = dma.hbm_to_vmem [thread:$0]  %s700_s0, 256, %s15_s7, [#allocation3]  }
   0xc   :  { %562 = dma.done.wait [#allocation3], 256  }
   0xd   :  { %563 = vsyncadd [#allocation3], 4294967040  ;;  %v590_v0 = vld [vmem:[#allocation2] sm:$0xff]  ;;  %s567_s11 = smov 80   ;;  %s568_s12 = smov 112   ;;  %v598_v1 = vld [vmem:[#allocation2 + $0x8] sm:$0xff]  ;;  %v72_v6 = vlaneseq }
   0xe   :  { %30 = vrot.lane.b32.xlu1 %v590_v0, %s567_s11  ;;  %24 = vrot.lane.b32.xlu0 %v590_v0, %s568_s12  ;;  %s569_s13 = smov 64   ;;  %s570_s14 = smov 96   ;;  %v574_v4 = vmov 1983009808   ;;  %v575_v12 = vmov 1934713408  }
   0xf   :  { %s571_s15 = smov 32   ;;  %s572_s0 = smov 48   ;;  %v70_v5 = vunpack.c.l.s4 %v574_v4  ;;  %v617_v10 = vshrl.u32 %v72_v6, 7  ;;  %v134_v13 = vunpack.c.l.s4 %v575_v12  ;;  %vm339_vm0 = vcmask 130048  }
  0x10   :  { %s573_s16 = smov 16   ;;  %vm415_vm1 = vcmask 130112   ;;  %vm480_vm2 = vcmask 1041409   ;;  %vm482_vm3 = vcmask 1042434   ;;  %vm484_vm4 = vcmask 1043459   ;;  %s576_s17 = smov [#allocation5]  }
  0x11   :  { %v71_v9 = vunpack.c.0.s8 %v70_v5  ;;  %v135_v20 = vunpack.c.0.s8 %v134_v13  ;;  %vm486_vm5 = vcmask 1044484   ;;  %vm488_vm6 = vcmask 1045509   ;;  %s502_s18 = sshll.u32 %s576_s17, 4  ;;  %s503_s18 = int_to_ptr.vmem [resolvable:$true] %s502_s18 }
  0x12   :  { %33 = vrot.lane.b32.xlu1 %v590_v0, %s569_s13  ;;  %27 = vrot.lane.b32.xlu0 %v590_v0, %s570_s14  ;;  %vm490_vm7 = vcmask 1046534   ;;  %vm492_vm8 = vcmask 1047559   ;;  %s542_s19 = scalar_lea.vmem %s503_s18, 128  ;;  %p547_p6 = scmp.lt.s32.totalorder %s503_s18, %s503_s18 }
  0x13   :  { %v622_v16 = vsub.s32 %v71_v9, %v617_v10  ;;  %v632_v28 = vsub.s32 %v135_v20, %v617_v10  ;;  %p543_p5 = scmp.ne.s32.totalorder %s503_s18, %s542_s19  ;;  %p548_p7 = scmp.lt.s32.totalorder %s542_s19, %s542_s19 }
  0x15   :  { %p549_p8 = por %p548_p7, %p547_p6 }
  0x16   :  { %39 = vrot.lane.b32.xlu1 %v590_v0, %s571_s15  ;;  %36 = vrot.lane.b32.xlu0 %v590_v0, %s572_s0 }
  0x17   :  { %p550_p9 = pnand %p549_p8, %p543_p5 }
  0x1a   :  { %46 = vrot.lane.b32.xlu1 %v598_v1, %s568_s12  ;;  %42 = vrot.lane.b32.xlu0 %v590_v0, %s573_s16 }
  0x1e   :  { %52 = vrot.lane.b32.xlu1 %v598_v1, %s567_s11  ;;  %49 = vrot.lane.b32.xlu0 %v598_v1, %s570_s14 }
  0x22   :  { %58 = vrot.lane.b32.xlu1 %v598_v1, %s572_s0  ;;  %55 = vrot.lane.b32.xlu0 %v598_v1, %s569_s13 }
  0x26   :  { %64 = vrot.lane.b32.xlu1 %v598_v1, %s573_s16  ;;  %61 = vrot.lane.b32.xlu0 %v598_v1, %s571_s15 }
  0x80   :  { %v608_v2 = vpop.permute.xlu1 %30  ;;  %v610_v3 = vpop.permute.xlu0 %24 }
  0x81   :  { %v83_v17 = vcombine.low %v610_v3, %v608_v2  ;;  %v84_v63 = vcombine.high %v610_v3, %v608_v2 }
  0x83   :  { %v91_v23 = vrot.slane %v83_v17, %v622_v16 }
  0x84   :  { %v612_v7 = vpop.permute.xlu1 %33  ;;  %v614_v8 = vpop.permute.xlu0 %27 }
  0x85   :  { %v67_v11 = vcombine.low %v590_v0, %v614_v8  ;;  %v68_v55 = vcombine.high %v590_v0, %v614_v8 }
  0x87   :  { %v75_v18 = vrot.slane %v67_v11, %v622_v16  ;;  %v82_v11 = vrot.slane %v68_v55, %v622_v16 }
  0x88   :  { %v40_v14 = vpop.permute.xlu1 %39  ;;  %v37_v15 = vpop.permute.xlu0 %36 }
  0x89   :  { %v99_v19 = vcombine.low %v612_v7, %v40_v14  ;;  %v131_v25 = vcombine.low %v75_v18, %v91_v23  ;;  %v132_v56 = vcombine.high %v75_v18, %v91_v23  ;;  %v100_v57 = vcombine.high %v612_v7, %v40_v14 }
  0x8a   :  { %v98_v18 = vrot.slane %v84_v63, %v622_v16 }
  0x8b   :  { %v107_v26 = vrot.slane %v99_v19, %v622_v16  ;;  %v139_v34 = vrot.slane %v131_v25, %v632_v28  ;;  %v114_v12 = vrot.slane %v100_v57, %v622_v16  ;;  %v146_v3 = vrot.slane %v132_v56, %v632_v28 }
  0x8c   :  { %v47_v21 = vpop.permute.xlu1 %46  ;;  %v43_v22 = vpop.permute.xlu0 %42  ;;  %v147_v25 = vcombine.low %v82_v11, %v98_v18 }
  0x8d   :  { %v115_v24 = vcombine.low %v37_v15, %v43_v22  ;;  %v116_v47 = vcombine.high %v37_v15, %v43_v22 }
  0x8f   :  { %v123_v27 = vrot.slane %v115_v24, %v622_v16  ;;  %v130_v4 = vrot.slane %v116_v47, %v622_v16 }
  0x90   :  { %v53_v29 = vpop.permute.xlu1 %52  ;;  %v50_v30 = vpop.permute.xlu0 %49 }
  0x91   :  { %v163_v31 = vcombine.low %v107_v26, %v123_v27  ;;  %v219_v32 = vcombine.low %v47_v21, %v53_v29  ;;  %v203_v33 = vcombine.low %v598_v1, %v50_v30  ;;  %v164_v48 = vcombine.high %v107_v26, %v123_v27 }
  0x92   :  { %v220_v58 = vcombine.high %v47_v21, %v53_v29  ;;  %v204_v59 = vcombine.high %v598_v1, %v50_v30  ;;  %v179_v19 = vcombine.low %v114_v12, %v130_v4 }
  0x93   :  { %v171_v35 = vrot.slane %v163_v31, %v632_v28  ;;  %v227_v39 = vrot.slane %v219_v32, %v622_v16  ;;  %v211_v40 = vrot.slane %v203_v33, %v622_v16  ;;  %v178_v9 = vrot.slane %v164_v48, %v632_v28 }
  0x94   :  { %v59_v36 = vpop.permute.xlu1 %58  ;;  %v56_v37 = vpop.permute.xlu0 %55  ;;  %v234_v2 = vrot.slane %v220_v58, %v622_v16  ;;  %v218_v13 = vrot.slane %v204_v59, %v622_v16  ;;  %v187_v29 = vrot.slane %v179_v19, %v632_v28  ;;  %v155_v33 = vrot.slane %v147_v25, %v632_v28 }
  0x95   :  { %v195_v38 = vcombine.low %v139_v34, %v171_v35  ;;  %v196_v41 = vcombine.high %v139_v34, %v171_v35  ;;  %v267_v49 = vcombine.low %v211_v40, %v227_v39  ;;  %v268_v60 = vcombine.high %v211_v40, %v227_v39 }
  0x96   :  { %v197_v20 = vcombine.low %v146_v3, %v178_v9  ;;  %v283_v26 = vcombine.low %v218_v13, %v234_v2  ;;  %v198_v27 = vcombine.high %v146_v3, %v178_v9  ;;  %v180_v35 = vcombine.high %v114_v12, %v130_v4 }
  0x97   :  { %v340_v42 = vsel %vm339_vm0, %v195_v38, -inf  ;;  %v346_v50 = vsel %vm339_vm0, %v196_v41, -inf  ;;  %v275_v5 = vrot.slane %v267_v49, %v632_v28  ;;  %v282_v17 = vrot.slane %v268_v60, %v632_v28 }
  0x98   :  { %v65_v43 = vpop.permute.xlu1 %64  ;;  %341 = vmax.xlane.f32.xlu0 %v340_v42  ;;  %v62_v44 = vpop.permute.xlu0 %61  ;;  %v352_v31 = vsel %vm339_vm0, %v197_v20, -inf  ;;  %v291_v34 = vrot.slane %v283_v26, %v632_v28  ;;  %v358_v39 = vsel %vm339_vm0, %v198_v27, -inf  ;;  %v148_v41 = vcombine.high %v82_v11, %v98_v18 }
  0x99   :  { %v251_v45 = vcombine.low %v59_v36, %v65_v43  ;;  %v235_v46 = vcombine.low %v56_v37, %v62_v44  ;;  %v252_v51 = vcombine.high %v59_v36, %v65_v43  ;;  %v236_v53 = vcombine.high %v56_v37, %v62_v44 }
  0x9a   :  { %v199_v36 = vcombine.low %v155_v33, %v187_v29  ;;  %v284_v42 = vcombine.high %v218_v13, %v234_v2  ;;  %v194_v44 = vrot.slane %v180_v35, %v632_v28  ;;  %v200_v47 = vcombine.high %v155_v33, %v187_v29 }
  0x9b   :  { %v259_v52 = vrot.slane %v251_v45, %v622_v16  ;;  %v243_v54 = vrot.slane %v235_v46, %v622_v16  ;;  %v266_v0 = vrot.slane %v252_v51, %v622_v16  ;;  %v250_v7 = vrot.slane %v236_v53, %v622_v16 }
  0x9c   :  { %347 = vmax.xlane.f32.xlu0 %v346_v50  ;;  %v364_v43 = vsel %vm339_vm0, %v199_v36, -inf  ;;  %v298_v49 = vrot.slane %v284_v42, %v632_v28  ;;  %v162_v50 = vrot.slane %v148_v41, %v632_v28  ;;  %v405_v9 = vand.u32 127, %v72_v6 }
  0x9d   :  { %v299_v61 = vcombine.low %v243_v54, %v259_v52  ;;  %v300_v62 = vcombine.high %v243_v54, %v259_v52  ;;  %v315_v21 = vcombine.low %v250_v7, %v266_v0  ;;  %v316_v37 = vcombine.high %v250_v7, %v266_v0 }
  0x9e   :  { %v370_v52 = vsel %vm339_vm0, %v200_v47, -inf  ;;  %v201_v54 = vcombine.low %v162_v50, %v194_v44  ;;  %v202_v58 = vcombine.high %v162_v50, %v194_v44  ;;  %v410_v0 = vadd.s32 4294967288, %v405_v9 }
  0x9f   :  { %v307_v8 = vrot.slane %v299_v61, %v632_v28  ;;  %v314_v1 = vrot.slane %v300_v62, %v632_v28  ;;  %v323_v32 = vrot.slane %v315_v21, %v632_v28  ;;  %v330_v48 = vrot.slane %v316_v37, %v632_v28 }
  0xa0   :  { %v376_v56 = vsel %vm339_vm0, %v201_v54, -inf  ;;  %v382_v28 = vsel %vm339_vm0, %v202_v58, -inf  ;;  %v408_v2 = vsub.s32 %v405_v9, %v617_v10 }
  0xa1   :  { %v332_v14 = vcombine.high %v275_v5, %v307_v8  ;;  %v331_v15 = vcombine.low %v275_v5, %v307_v8  ;;  %v333_v24 = vcombine.low %v282_v17, %v314_v1  ;;  %v334_v16 = vcombine.high %v282_v17, %v314_v1 }
  0xa2   :  { %v335_v40 = vcombine.low %v291_v34, %v323_v32  ;;  %v336_v46 = vcombine.high %v291_v34, %v323_v32  ;;  %v337_v53 = vcombine.low %v298_v49, %v330_v48  ;;  %v338_v57 = vcombine.high %v298_v49, %v330_v48 }
  0xa3   :  { %v349_v22 = vsel %vm339_vm0, %v332_v14, -inf  ;;  %v343_v23 = vsel %vm339_vm0, %v331_v15, -inf  ;;  %v355_v30 = vsel %vm339_vm0, %v333_v24, -inf  ;;  %v361_v38 = vsel %vm339_vm0, %v334_v16, -inf }
  0xa4   :  { %350 = vmax.xlane.f32.xlu0 %v349_v22  ;;  %344 = vmax.xlane.f32.xlu1 %v343_v23  ;;  %v367_v45 = vsel %vm339_vm0, %v335_v40, -inf  ;;  %v373_v51 = vsel %vm339_vm0, %v336_v46, -inf  ;;  %v379_v55 = vsel %vm339_vm0, %v337_v53, -inf  ;;  %v385_v59 = vsel %vm339_vm0, %v338_v57, -inf }
  0xa5   :  { %v413_v1 = vsub.s32 %v410_v0, %v617_v10 }
  0xa8   :  { %356 = vmax.xlane.f32.xlu0 %v355_v30  ;;  %353 = vmax.xlane.f32.xlu1 %v352_v31 }
  0xac   :  { %362 = vmax.xlane.f32.xlu0 %v361_v38  ;;  %359 = vmax.xlane.f32.xlu1 %v358_v39 }
  0xb0   :  { %368 = vmax.xlane.f32.xlu0 %v367_v45  ;;  %365 = vmax.xlane.f32.xlu1 %v364_v43 }
  0xb4   :  { %374 = vmax.xlane.f32.xlu0 %v373_v51  ;;  %371 = vmax.xlane.f32.xlu1 %v370_v52 }
  0xb8   :  { %380 = vmax.xlane.f32.xlu0 %v379_v55  ;;  %377 = vmax.xlane.f32.xlu1 %v376_v56 }
  0xbc   :  { %386 = vmax.xlane.f32.xlu0 %v385_v59  ;;  %383 = vmax.xlane.f32.xlu1 %v382_v28 }
 0x121   :  { %v342_v60 = vpop.xlane.xlu0 %341 }
 0x122   :  { %v409_v19 = vrot.slane %v342_v60, %v408_v2 }
 0x125   :  { %v348_v61 = vpop.xlane.xlu0 %347 }
 0x126   :  { %v420_v20 = vrot.slane %v348_v61, %v408_v2 }
 0x12d   :  { %v345_v62 = vpop.xlane.xlu1 %344  ;;  %v351_v63 = vpop.xlane.xlu0 %350 }
 0x12e   :  { %v414_v3 = vrot.slane %v345_v62, %v413_v1  ;;  %v424_v13 = vrot.slane %v351_v63, %v413_v1 }
 0x130   :  { %v416_v24 = vsel %vm415_vm1, %v414_v3, %v409_v19  ;;  %v425_v25 = vsel %vm415_vm1, %v424_v13, %v420_v20 }
 0x131   :  { %v354_v4 = vpop.xlane.xlu1 %353  ;;  %v357_v5 = vpop.xlane.xlu0 %356  ;;  %v481_v33 = vsel %vm480_vm2, %v425_v25, %v416_v24 }
 0x132   :  { %v429_v14 = vrot.slane %v354_v4, %v408_v2  ;;  %v433_v15 = vrot.slane %v357_v5, %v413_v1 }
 0x134   :  { %v434_v27 = vsel %vm415_vm1, %v433_v15, %v429_v14 }
 0x135   :  { %v360_v7 = vpop.xlane.xlu1 %359  ;;  %v363_v8 = vpop.xlane.xlu0 %362  ;;  %v483_v35 = vsel %vm482_vm3, %v434_v27, %v481_v33 }
 0x136   :  { %v438_v21 = vrot.slane %v360_v7, %v408_v2  ;;  %v442_v6 = vrot.slane %v363_v8, %v413_v1 }
 0x138   :  { %v443_v31 = vsel %vm415_vm1, %v442_v6, %v438_v21 }
 0x139   :  { %v366_v11 = vpop.xlane.xlu1 %365  ;;  %v369_v12 = vpop.xlane.xlu0 %368  ;;  %v485_v37 = vsel %vm484_vm4, %v443_v31, %v483_v35 }
 0x13a   :  { %v447_v22 = vrot.slane %v366_v11, %v408_v2  ;;  %v451_v23 = vrot.slane %v369_v12, %v413_v1 }
 0x13c   :  { %v452_v34 = vsel %vm415_vm1, %v451_v23, %v447_v22 }
 0x13d   :  { %v372_v17 = vpop.xlane.xlu1 %371  ;;  %v375_v18 = vpop.xlane.xlu0 %374  ;;  %v487_v41 = vsel %vm486_vm5, %v452_v34, %v485_v37 }
 0x13e   :  { %v456_v26 = vrot.slane %v372_v17, %v408_v2  ;;  %v460_v10 = vrot.slane %v375_v18, %v413_v1 }
 0x140   :  { %v461_v36 = vsel %vm415_vm1, %v460_v10, %v456_v26 }
 0x141   :  { %v378_v29 = vpop.xlane.xlu1 %377  ;;  %v381_v30 = vpop.xlane.xlu0 %380  ;;  %v489_v44 = vsel %vm488_vm6, %v461_v36, %v487_v41 }
 0x142   :  { %v465_v16 = vrot.slane %v378_v29, %v408_v2  ;;  %v469_v32 = vrot.slane %v381_v30, %v413_v1 }
 0x144   :  { %v470_v38 = vsel %vm415_vm1, %v469_v32, %v465_v16 }
 0x145   :  { %v384_v39 = vpop.xlane.xlu1 %383  ;;  %v387_v40 = vpop.xlane.xlu0 %386  ;;  %v491_v46 = vsel %vm490_vm7, %v470_v38, %v489_v44 }
 0x146   :  { %v474_v42 = vrot.slane %v384_v39, %v408_v2  ;;  %v478_v43 = vrot.slane %v387_v40, %v413_v1 }
 0x148   :  { %v479_v45 = vsel %vm415_vm1, %v478_v43, %v474_v42 }
 0x149   :  { %v493_v47 = vsel %vm492_vm8, %v479_v45, %v491_v46 }
 0x14a   :  { %495 = vst.msk [vmem:[#allocation5] sm:$0xff] %vm339_vm0, %v493_v47 }
 0x14b   :  { %553 = shalt.err (!%p550_p9)
}
 0x14c   :  { %505 = dma.vmem_to_hbm [thread:$0]  %s503_s18, 128, %s701_s1, [#allocation4]  }
 0x14d   :  { %564 = dma.done.wait [#allocation4], 128  }
 0x14e   :  { %565 = vsyncadd [#allocation4], 4294967168 }
 0x14f   :  { %509 = vsyncpa [#allocation3], 1 }
 0x150   :  { %510 = vsyncpa [#allocation4], 1 }

</bundles_post_ra>
